<compile_context>
chip_gen: v6e
topology: v6e:2x2x1
jax: 0.10.0
libtpu: 0.0.40
codegen_flags: <defaults>
</compile_context>

<pallas_src>
from functools import partial

import jax
import jax.numpy as jnp
from jax.experimental import pallas as pl
from jax.experimental.pallas import tpu as pltpu

EPS = 1e-6                       # LayerNorm eps (norm_layer=partial(nn.LayerNorm, eps=1e-6))
MATMUL_DTYPE = jnp.bfloat16      # matmul operand / intermediate dtype (f32 accumulation);
                                 # set to jnp.float32 for a bit-faithful f32 forward.


def _pick_vmem_limit():
    """Half the physical per-core VMEM (clamped to [32, 96] MiB); 32 MiB fallback."""
    try:
        phys = int(pltpu.get_tpu_info().vmem_capacity_bytes)
        return int(min(max(phys // 2, 32 * 1024 * 1024), 96 * 1024 * 1024))
    except Exception:
        return 32 * 1024 * 1024


_VMEM_LIMIT = _pick_vmem_limit()
_CP_2D = pltpu.CompilerParams(dimension_semantics=("parallel", "parallel"),
                              vmem_limit_bytes=_VMEM_LIMIT)
_CP_1D = pltpu.CompilerParams(dimension_semantics=("parallel",),
                              vmem_limit_bytes=_VMEM_LIMIT)


# --------------------------- in-kernel helpers ------------------------------
def _ln(x, g, b):
    mu = jnp.mean(x, axis=-1, keepdims=True)
    xc = x - mu
    var = jnp.mean(xc * xc, axis=-1, keepdims=True)
    return xc * jax.lax.rsqrt(var + EPS) * g + b


def _erf(z):
    # Abramowitz & Stegun 7.1.26 polynomial, |abs err| <= 1.5e-7 (~f32 eps).
    # TODO(synk): used instead of lax.erf since an erf Mosaic lowering is not guaranteed.
    a1, a2, a3, a4, a5 = (0.254829592, -0.284496736, 1.421413741,
                          -1.453152027, 1.061405429)
    p = 0.3275911
    s = jnp.where(z >= 0.0, 1.0, -1.0)
    az = jnp.abs(z)
    t = 1.0 / (1.0 + p * az)
    poly = ((((a5 * t + a4) * t + a3) * t + a2) * t + a1) * t
    return s * (1.0 - poly * jnp.exp(-az * az))


def _gelu_exact(x):
    return 0.5 * x * (1.0 + _erf(x * 0.7071067811865476))


# ------------------ K0: feat LayerNorm + value projection -------------------
def _value_kernel(f_ref, lnf_ref, wval_ref, bval_ref, val_ref):
    fn = _ln(f_ref[...], lnf_ref[0:1, :], lnf_ref[1:2, :])
    val_ref[...] = (jnp.dot(fn.astype(wval_ref.dtype), wval_ref[...],
                            preferred_element_type=jnp.float32)
                    + bval_ref[0, :]).astype(val_ref.dtype)


# ---- K1: query LN + fused offset|attn proj + per-head softmax + in-VMEM ----
# ---- deformable sampling + output_proj + residual + ffn_norm + fc1      ----
def _attn_ffn_kernel(q_ref, ref_ref, val_ref, lnq_ref, wcat_ref, bcat_ref,
                     wout_ref, bout_ref, lnffn_ref, wfc1_ref, bfc1_ref,
                     q2_ref, h1_ref, *, Hl, Wl, n_heads, n_points, head_dim):
    M, P, Dh = n_heads, n_points, head_dim
    n_col = M * P                               # columns per x / y / attn block (L == 1)

    q_raw = q_ref[...]
    t_q = q_raw.shape[0]
    qn = _ln(q_raw, lnq_ref[0:1, :], lnq_ref[1:2, :])

    # one wide MXU matmul: [x offsets | y offsets | attention logits], (m,p) column order
    proj = (jnp.dot(qn.astype(wcat_ref.dtype), wcat_ref[...],
                    preferred_element_type=jnp.float32) + bcat_ref[0, :])
    off_x = proj[:, :n_col]
    off_y = proj[:, n_col:2 * n_col]
    logits = proj[:, 2 * n_col:]

    # exact per-head softmax (per-head max -> no cross-head underflow / NaN risk)
    attw_heads = []
    for m in range(M):
        lg = logits[:, m * P:(m + 1) * P]
        e = jnp.exp(lg - jnp.max(lg, axis=-1, keepdims=True))
        attw_heads.append(e * pl.reciprocal(jnp.sum(e, axis=-1, keepdims=True),
                                            approx=True))
    attw = jnp.concatenate(attw_heads, axis=-1)                     # (t, n_col)

    # sampling pixel coords; the offset normalizer cancels with grid_sample's
    # align_corners=False scaling:  px = (ref_x + off_x/W)*W - 0.5 = ref_x*W + off_x - 0.5
    px = ref_ref[:, 0:1] * float(Wl) + off_x - 0.5
    py = ref_ref[:, 1:2] * float(Hl) + off_y - 0.5
    x0f = jnp.floor(px)
    y0f = jnp.floor(py)
    lx = px - x0f
    ly = py - y0f
    x0 = x0f.astype(jnp.int32)
    y0 = y0f.astype(jnp.int32)

    # 4 bilinear corners: flat index + (attention * bilinear * validity) coefficient
    flats, coeffs = [], []
    for dy in (0, 1):
        yi = y0 + dy
        wy = ly if dy else 1.0 - ly
        yok = (yi >= 0) & (yi < Hl)
        yc = jnp.clip(yi, 0, Hl - 1)
        for dx in (0, 1):
            xi = x0 + dx
            wx = lx if dx else 1.0 - lx
            ok = yok & (xi >= 0) & (xi < Wl)                         # zeros padding mode
            flats.append(yc * Wl + jnp.clip(xi, 0, Wl - 1))          # (t, n_col) i32
            coeffs.append(attw * wx * wy * ok.astype(jnp.float32))   # (t, n_col) f32

    # gather + weighted reduce as per-head one-hot matmuls on the MXU.
    # TODO(synk): an in-kernel jnp.take gather over the VMEM value ref would skip the
    # one-hot build; kept as compare+select+matmul for guaranteed Mosaic lowering.
    v = val_ref[...]                                                 # (Nf, C) bf16, resident
    n_feat = Hl * Wl
    pos = jax.lax.broadcasted_iota(jnp.int32, (t_q, n_feat), 1)
    head_outs = []
    for m in range(M):
        s = jnp.zeros((t_q, n_feat), jnp.float32)
        for k in range(4):
            fl, cf = flats[k], coeffs[k]
            for pp in range(P):
                c = m * P + pp
                s = s + jnp.where(pos == fl[:, c:c + 1], cf[:, c:c + 1], 0.0)
        head_outs.append(jnp.dot(s.astype(v.dtype), v[:, m * Dh:(m + 1) * Dh],
                                 preferred_element_type=jnp.float32))
    sampled = jnp.concatenate(head_outs, axis=-1)                    # (t, C)

    attn = (jnp.dot(sampled.astype(wout_ref.dtype), wout_ref[...],
                    preferred_element_type=jnp.float32) + bout_ref[0, :])
    q2 = q_raw + attn                     # residual uses the raw (un-normed) query
    q2_ref[...] = q2
    hn = _ln(q2, lnffn_ref[0:1, :], lnffn_ref[1:2, :])
    h1 = (jnp.dot(hn.astype(wfc1_ref.dtype), wfc1_ref[...],
                  preferred_element_type=jnp.float32) + bfc1_ref[0, :])
    h1_ref[...] = h1.astype(h1_ref.dtype)


# ------ K2: 3x3 depthwise conv + GELU (NHWC), zero halo built in VMEM -------
def _dwconv_kernel(x_ref, k_ref, b_ref, y_ref, pad_ref, *, hs, ws):
    hid = pad_ref.shape[-1]
    # zero only the 1-pixel border (4 strips), then copy the interior once
    pad_ref[0:1, :, :] = jnp.zeros((1, ws + 2, hid), jnp.float32)
    pad_ref[hs + 1:hs + 2, :, :] = jnp.zeros((1, ws + 2, hid), jnp.float32)
    pad_ref[:, 0:1, :] = jnp.zeros((hs + 2, 1, hid), jnp.float32)
    pad_ref[:, ws + 1:ws + 2, :] = jnp.zeros((hs + 2, 1, hid), jnp.float32)
    pad_ref[1:1 + hs, 1:1 + ws, :] = x_ref[...].astype(jnp.float32)
    acc = None
    for dx in range(3):                      # one sublane-offset view per dx ...
        col = pad_ref[:, dx:dx + ws, :]      # (hs+2, ws, hid)
        for dy in range(3):                  # ... reused across 3 cheap outer-dim shifts
            term = col[dy:dy + hs] * k_ref[3 * dy + dx, :]
            acc = term if acc is None else acc + term
    y_ref[...] = _gelu_exact(acc + b_ref[0, :]).astype(y_ref.dtype)


# ------------------------- K3: fc2 + residual -------------------------------
def _fc2_kernel(a_ref, q2_ref, wfc2_ref, bfc2_ref, out_ref):
    out_ref[...] = (q2_ref[...]
                    + jnp.dot(a_ref[...].astype(wfc2_ref.dtype), wfc2_ref[...],
                              preferred_element_type=jnp.float32)
                    + bfc2_ref[0, :])


# ------------------------------ spec helpers --------------------------------
def _tok_spec(t, d):
    return pl.BlockSpec((None, t, d), lambda b, i: (b, i, 0))


def _w_spec(arr, grid_rank=2):
    nd = arr.ndim
    if grid_rank == 1:
        return pl.BlockSpec(arr.shape, lambda b, _n=nd: (0,) * _n)
    return pl.BlockSpec(arr.shape, lambda b, i, _n=nd: (0,) * _n)


def _pick_tile(n, cap):
    """Largest token-tile that is a multiple of 8, <= cap and (if possible)
    divides n. Rows are independent in every kernel, so a partial trailing
    block is still correct."""
    if n <= cap:
        return n
    t = cap - cap % 8
    while t >= 8:
        if n % t == 0:
            return t
        t -= 8
    return cap - cap % 8


# -------------------- one-time parameter preprocessing ----------------------
def pack_params(params):
    """Hoisted weight prep: bf16 casts, fused offset|attn projection with the
    sampling-offset columns permuted from (m,l,p,[x,y]) interleaved order to
    [all-x | all-y] (m,l,p) order so the kernel can slice dense x / y blocks."""
    if "W_cat" in params:
        return params
    M, P, L = params["n_heads"], params["n_points"], params["n_levels"]
    n_col = M * L * P
    mdt = MATMUL_DTYPE
    xcols = jnp.arange(n_col, dtype=jnp.int32) * 2
    perm = jnp.concatenate([xcols, xcols + 1])
    packed = dict(params)
    packed["W_cat"] = jnp.concatenate(
        [params["W_off"][:, perm], params["W_att"]], axis=1).astype(mdt)
    packed["b_cat"] = jnp.concatenate(
        [params["b_off"][:, perm], params["b_att"]], axis=1).astype(jnp.float32)
    for k in ("W_val", "W_out", "W_fc1", "W_fc2"):
        packed[k] = params[k].astype(mdt)
    return packed


# ------------------------------ forward pass --------------------------------
def multiscale_extractor_forward(query, reference_points, feat,
                                 spatial_shapes, level_start_index, H, W, params,
                                 max_tile_tokens=None):
    p = pack_params(params)
    B, N, C = query.shape
    Nf = feat.shape[1]
    M, P = p["n_heads"], p["n_points"]
    Dh = C // M
    hid = p["hidden"]
    L = len(spatial_shapes)
    n = (H * W) // 4
    assert N == 21 * n, "query must hold the 3-scale pyramid (16n + 4n + n tokens)"
    assert sum(h_ * w_ for (h_, w_) in spatial_shapes) == Nf
    # TODO(synk): the in-kernel deformable sampling is specialized to the module's
    # n_levels == 1 (ViT-CoMer extractor / deform_inputs); multi-level feat pyramids
    # would need per-level value slabs and per-column level constants.
    assert L == 1 and p["n_levels"] == 1 and level_start_index[0] == 0
    Hl, Wl = spatial_shapes[0]

    if max_tile_tokens is None:
        max_tile_tokens = 1024 if _VMEM_LIMIT >= 64 * 1024 * 1024 else 512
    t_q = _pick_tile(N, max_tile_tokens)
    t_f = _pick_tile(Nf, max_tile_tokens)

    # reference points -> (B, N, 2) (single level), tiny broadcast done once
    rp = reference_points.reshape(reference_points.shape[0], N, -1).astype(jnp.float32)
    assert rp.shape[-1] == 2
    rp = jnp.broadcast_to(rp, (B, N, 2))

    # ---- K0: feat_norm + value_proj (bf16; consumed whole-batch by K1) ----
    value = pl.pallas_call(
        _value_kernel,
        out_shape=jax.ShapeDtypeStruct((B, Nf, C), MATMUL_DTYPE),
        grid_spec=pltpu.PrefetchScalarGridSpec(
            num_scalar_prefetch=0, grid=(B, pl.cdiv(Nf, t_f)),
            in_specs=[_tok_spec(t_f, C), _w_spec(p["ln_feat"]),
                      _w_spec(p["W_val"]), _w_spec(p["b_val"])],
            out_specs=_tok_spec(t_f, C)),
        compiler_params=_CP_2D,
    )(feat, p["ln_feat"], p["W_val"], p["b_val"])

    # ---- K1: fused attention + post block (value stays resident in VMEM) ----
    q2, h1 = pl.pallas_call(
        partial(_attn_ffn_kernel, Hl=Hl, Wl=Wl, n_heads=M, n_points=P, head_dim=Dh),
        out_shape=(jax.ShapeDtypeStruct((B, N, C), jnp.float32),
                   jax.ShapeDtypeStruct((B, N, hid), MATMUL_DTYPE)),
        grid_spec=pltpu.PrefetchScalarGridSpec(
            num_scalar_prefetch=0, grid=(B, pl.cdiv(N, t_q)),
            in_specs=[_tok_spec(t_q, C),
                      _tok_spec(t_q, 2),
                      pl.BlockSpec((None, Nf, C), lambda b, i: (b, 0, 0)),
                      _w_spec(p["ln_query"]), _w_spec(p["W_cat"]), _w_spec(p["b_cat"]),
                      _w_spec(p["W_out"]), _w_spec(p["b_out"]),
                      _w_spec(p["ln_ffn"]), _w_spec(p["W_fc1"]), _w_spec(p["b_fc1"])],
            out_specs=(_tok_spec(t_q, C), _tok_spec(t_q, hid))),
        compiler_params=_CP_2D,
    )(query, rp, value, p["ln_query"], p["W_cat"], p["b_cat"],
      p["W_out"], p["b_out"], p["ln_ffn"], p["W_fc1"], p["b_fc1"])

    # ---- K2: depthwise 3x3 conv + GELU per pyramid scale (NHWC, VMEM halo) ----
    # TODO(synk): rows are not tiled and hid (<128) sits on lanes; a row-tiled,
    # lane-repacked conv fused with fc2 is the remaining optimization step.
    dw_w, dw_b = p["dw_w"], p["dw_b"]
    scale_dims = [(2 * H, 2 * W), (H, W), (H // 2, W // 2)]
    tok_starts = [0, 16 * n, 20 * n]
    dw_parts = []
    for (Hs, Ws), st in zip(scale_dims, tok_starts):
        xs = h1[:, st:st + Hs * Ws, :].reshape(B, Hs, Ws, hid)
        ys = pl.pallas_call(
            partial(_dwconv_kernel, hs=Hs, ws=Ws),
            out_shape=jax.ShapeDtypeStruct((B, Hs, Ws, hid), MATMUL_DTYPE),
            grid_spec=pltpu.PrefetchScalarGridSpec(
                num_scalar_prefetch=0, grid=(B,),
                in_specs=[pl.BlockSpec((None, Hs, Ws, hid),
                                       lambda b: (b, 0, 0, 0)),
                          _w_spec(dw_w, grid_rank=1), _w_spec(dw_b, grid_rank=1)],
                out_specs=pl.BlockSpec((None, Hs, Ws, hid),
                                       lambda b: (b, 0, 0, 0)),
                scratch_shapes=[pltpu.VMEM((Hs + 2, Ws + 2, hid), jnp.float32)]),
            compiler_params=_CP_1D,
        )(xs, dw_w, dw_b)
        dw_parts.append(ys.reshape(B, Hs * Ws, hid))
    dw = jnp.concatenate(dw_parts, axis=1)              # (B, N, hid) bf16, GELU applied

    # ---- K3: fc2 + residual ----
    out = pl.pallas_call(
        _fc2_kernel,
        out_shape=jax.ShapeDtypeStruct((B, N, C), jnp.float32),
        grid_spec=pltpu.PrefetchScalarGridSpec(
            num_scalar_prefetch=0, grid=(B, pl.cdiv(N, t_q)),
            in_specs=[_tok_spec(t_q, hid), _tok_spec(t_q, C),
                      _w_spec(p["W_fc2"]), _w_spec(p["b_fc2"])],
            out_specs=_tok_spec(t_q, C)),
        compiler_params=_CP_2D,
    )(dw, q2, p["W_fc2"], p["b_fc2"])
    return out


# --------------------------- parameter / input init -------------------------
def init_params(key, C, n_heads, n_points, n_levels, cffn_ratio=0.25):
    hid = int(C * cffn_ratio)
    lp = n_levels * n_points
    Doff, Datt = n_heads * lp * 2, n_heads * lp
    ks = jax.random.split(key, 20)
    f32 = jnp.float32

    def lin(k, fi, fo, s=0.02):
        return (s * jax.random.normal(k, (fi, fo))).astype(f32)

    def ln_pair(k1, k2, d):
        return jnp.stack([(1.0 + 0.05 * jax.random.normal(k1, (d,))).astype(f32),
                          (0.05 * jax.random.normal(k2, (d,))).astype(f32)], 0)

    return {
        "n_heads": n_heads, "n_points": n_points, "n_levels": n_levels, "hidden": hid,
        "ln_query": ln_pair(ks[0], ks[1], C),
        "ln_feat": ln_pair(ks[2], ks[3], C),
        "ln_ffn": ln_pair(ks[4], ks[5], C),
        "W_off": lin(ks[6], C, Doff, 0.05),
        "b_off": (0.5 * jax.random.normal(ks[7], (1, Doff))).astype(f32),
        "W_att": lin(ks[8], C, Datt),
        "b_att": (0.02 * jax.random.normal(ks[9], (1, Datt))).astype(f32),
        "W_val": lin(ks[10], C, C),
        "b_val": (0.02 * jax.random.normal(ks[11], (1, C))).astype(f32),
        "W_out": lin(ks[12], C, C),
        "b_out": (0.02 * jax.random.normal(ks[13], (1, C))).astype(f32),
        "W_fc1": lin(ks[14], C, hid),
        "b_fc1": (0.02 * jax.random.normal(ks[15], (1, hid))).astype(f32),
        "dw_w": (0.1 * jax.random.normal(ks[16], (9, hid))).astype(f32),   # (9, hid) <- (hid,1,3,3) row-major (ky,kx)
        "dw_b": (0.02 * jax.random.normal(ks[17], (1, hid))).astype(f32),
        "W_fc2": lin(ks[18], hid, C),
        "b_fc2": (0.02 * jax.random.normal(ks[19], (1, C))).astype(f32),
    }


def build_extractor_deform_inputs(H, W):
    """Matches ViT-CoMer deform_inputs()[1]: query = 3-scale pyramid tokens,
    feat = ViT tokens at (H, W); reference points over the query grids."""
    q_scales = [(2 * H, 2 * W), (H, W), (H // 2, W // 2)]
    refs = []
    for (Hl, Wl) in q_scales:
        yy, xx = jnp.meshgrid((jnp.arange(Hl, dtype=jnp.float32) + 0.5) / Hl,
                              (jnp.arange(Wl, dtype=jnp.float32) + 0.5) / Wl,
                              indexing="ij")
        refs.append(jnp.stack([xx.reshape(-1), yy.reshape(-1)], axis=-1))
    reference_points = jnp.concatenate(refs, axis=0)[None, :, None, :]   # (1, N, 1, 2)
    spatial_shapes = [(H, W)]          # single feat level (n_levels = 1)
    level_start_index = [0]
    return reference_points, spatial_shapes, level_start_index


if __name__ == "__main__":
    key = jax.random.PRNGKey(0)
    B, C = 2, 64
    n_heads, n_points, n_levels = 4, 4, 1
    H = W = 8                          # ViT token grid
    n = (H * W) // 4
    N = 21 * n                         # 336 query tokens (16n + 4n + n pyramid)

    ref_pts, spatial_shapes, level_start_index = build_extractor_deform_inputs(H, W)
    Nf = sum(h_ * w_ for (h_, w_) in spatial_shapes)   # 64 feat tokens

    k1, k2, k3 = jax.random.split(key, 3)
    query = jax.random.normal(k1, (B, N, C), jnp.float32)
    feat = jax.random.normal(k2, (B, Nf, C), jnp.float32)
    params = pack_params(init_params(k3, C, n_heads, n_points, n_levels))  # hoisted prep

    out = multiscale_extractor_forward(query, ref_pts, feat, spatial_shapes,
                                       level_start_index, H, W, params,
                                       max_tile_tokens=128)   # 3 N-tiles per batch
    out = jax.block_until_ready(out)
    assert out.shape == (B, N, C) and out.dtype == jnp.float32
    print("KERNEL_OK")
</pallas_src>

<mosaic_0001>
module attributes {stable_mosaic.version = 11 : i64} {
  func.func @_value_kernel(%arg0: i32, %arg1: i32, %arg2: memref<1x64x64xf32, #tpu.memory_space<vmem>>, %arg3: memref<2x64xf32, #tpu.memory_space<vmem>>, %arg4: memref<64x64xbf16, #tpu.memory_space<vmem>>, %arg5: memref<1x64xf32, #tpu.memory_space<vmem>>, %arg6: memref<1x64x64xbf16, #tpu.memory_space<vmem>>) attributes {dimension_semantics = [#tpu.dimension_semantics<parallel>, #tpu.dimension_semantics<parallel>], iteration_bounds = array<i64: 2, 1>, scalar_prefetch = 0 : i64, scratch_operands = 0 : i64, tpu.core_type = #tpu.core_type<tc>, window_params = [{transform_indices = @transform_0, window_bounds = array<i64: 1, 64, 64>}, {pipeline_mode = #tpu.pipeline_mode<synchronous>, transform_indices = @transform_1, window_bounds = array<i64: 2, 64>}, {pipeline_mode = #tpu.pipeline_mode<synchronous>, transform_indices = @transform_2, window_bounds = array<i64: 64, 64>}, {pipeline_mode = #tpu.pipeline_mode<synchronous>, transform_indices = @transform_3, window_bounds = array<i64: 1, 64>}, {transform_indices = @transform_4, window_bounds = array<i64: 1, 64, 64>}]} {
    %c0 = arith.constant 0 : index
    %c0_0 = arith.constant 0 : index
    %c0_1 = arith.constant 0 : index
    %0 = vector.load %arg2[%c0, %c0_0, %c0_1] : memref<1x64x64xf32, #tpu.memory_space<vmem>>, vector<1x64x64xf32>
    %1 = vector.shape_cast %0 : vector<1x64x64xf32> to vector<64x64xf32>
    %c0_2 = arith.constant 0 : index
    %c0_3 = arith.constant 0 : index
    %2 = vector.load %arg3[%c0_2, %c0_3] : memref<2x64xf32, #tpu.memory_space<vmem>>, vector<1x64xf32>
    %c1 = arith.constant 1 : index
    %c0_4 = arith.constant 0 : index
    %3 = vector.load %arg3[%c1, %c0_4] : memref<2x64xf32, #tpu.memory_space<vmem>>, vector<1x64xf32>
    %cst = arith.constant dense<0.000000e+00> : vector<64xf32>
    %4 = vector.multi_reduction <add>, %1, %cst [1] : vector<64x64xf32> to vector<64xf32>
    %5 = vector.shape_cast %4 : vector<64xf32> to vector<64x1xf32>
    %cst_5 = arith.constant 6.400000e+01 : f32
    %6 = vector.broadcast %cst_5 : f32 to vector<64x1xf32>
    %7 = arith.divf %5, %6 : vector<64x1xf32>
    %8 = vector.broadcast %7 : vector<64x1xf32> to vector<64x64xf32>
    %9 = arith.subf %1, %8 : vector<64x64xf32>
    %10 = arith.mulf %9, %9 : vector<64x64xf32>
    %cst_6 = arith.constant dense<0.000000e+00> : vector<64xf32>
    %11 = vector.multi_reduction <add>, %10, %cst_6 [1] : vector<64x64xf32> to vector<64xf32>
    %12 = vector.shape_cast %11 : vector<64xf32> to vector<64x1xf32>
    %cst_7 = arith.constant 6.400000e+01 : f32
    %13 = vector.broadcast %cst_7 : f32 to vector<64x1xf32>
    %14 = arith.divf %12, %13 : vector<64x1xf32>
    %cst_8 = arith.constant 9.99999997E-7 : f32
    %15 = vector.broadcast %cst_8 : f32 to vector<64x1xf32>
    %16 = arith.addf %14, %15 : vector<64x1xf32>
    %17 = math.rsqrt %16 : vector<64x1xf32>
    %18 = vector.broadcast %17 : vector<64x1xf32> to vector<64x64xf32>
    %19 = arith.mulf %9, %18 : vector<64x64xf32>
    %20 = vector.broadcast %2 : vector<1x64xf32> to vector<64x64xf32>
    %21 = arith.mulf %19, %20 : vector<64x64xf32>
    %22 = vector.broadcast %3 : vector<1x64xf32> to vector<64x64xf32>
    %23 = arith.addf %21, %22 : vector<64x64xf32>
    %24 = arith.truncf %23 : vector<64x64xf32> to vector<64x64xbf16>
    %c0_9 = arith.constant 0 : index
    %c0_10 = arith.constant 0 : index
    %25 = vector.load %arg4[%c0_9, %c0_10] : memref<64x64xbf16, #tpu.memory_space<vmem>>, vector<64x64xbf16>
    %cst_11 = arith.constant dense<0.000000e+00> : vector<64x64xf32>
    %26 = tpu.matmul %24, %25, %cst_11 {dimension_numbers = #tpu.dot_dimension_numbers<[1], [0], [0], [1], [0, 0, 1, 1], [], []>} : vector<64x64xbf16>, vector<64x64xbf16>, vector<64x64xf32> -> vector<64x64xf32>
    %c0_12 = arith.constant 0 : index
    %c0_13 = arith.constant 0 : index
    %27 = vector.load %arg5[%c0_12, %c0_13] : memref<1x64xf32, #tpu.memory_space<vmem>>, vector<1x64xf32>
    %28 = vector.shape_cast %27 : vector<1x64xf32> to vector<64xf32>
    %29 = vector.shape_cast %28 : vector<64xf32> to vector<1x64xf32>
    %30 = vector.broadcast %29 : vector<1x64xf32> to vector<64x64xf32>
    %31 = arith.addf %26, %30 : vector<64x64xf32>
    %32 = arith.truncf %31 : vector<64x64xf32> to vector<64x64xbf16>
    %c0_14 = arith.constant 0 : index
    %c0_15 = arith.constant 0 : index
    %c0_16 = arith.constant 0 : index
    %33 = vector.load %arg6[%c0_14, %c0_15, %c0_16] : memref<1x64x64xbf16, #tpu.memory_space<vmem>>, vector<1x64x64xbf16>
    %34 = vector.shape_cast %33 : vector<1x64x64xbf16> to vector<64x64xbf16>
    %35 = vector.shape_cast %32 : vector<64x64xbf16> to vector<1x64x64xbf16>
    tpu.vector_store %arg6[%c0_14, %c0_15, %c0_16], %35 {strides = array<i32>} : memref<1x64x64xbf16, #tpu.memory_space<vmem>>, vector<1x64x64xbf16>,
    return
  }
  func.func @transform_0(%arg0: i32, %arg1: i32) -> (i32, i32, i32) {
    %c0_i32 = arith.constant 0 : i32
    %c0_i32_0 = arith.constant 0 : i32
    return %arg0, %arg1, %c0_i32 : i32, i32, i32
  }
  func.func @transform_1(%arg0: i32, %arg1: i32) -> (i32, i32) {
    %c0_i32 = arith.constant 0 : i32
    %c0_i32_0 = arith.constant 0 : i32
    %c0_i32_1 = arith.constant 0 : i32
    return %c0_i32, %c0_i32_0 : i32, i32
  }
  func.func @transform_2(%arg0: i32, %arg1: i32) -> (i32, i32) {
    %c0_i32 = arith.constant 0 : i32
    %c0_i32_0 = arith.constant 0 : i32
    %c0_i32_1 = arith.constant 0 : i32
    return %c0_i32, %c0_i32_0 : i32, i32
  }
  func.func @transform_3(%arg0: i32, %arg1: i32) -> (i32, i32) {
    %c0_i32 = arith.constant 0 : i32
    %c0_i32_0 = arith.constant 0 : i32
    %c0_i32_1 = arith.constant 0 : i32
    return %c0_i32, %c0_i32_0 : i32, i32
  }
  func.func @transform_4(%arg0: i32, %arg1: i32) -> (i32, i32, i32) {
    %c0_i32 = arith.constant 0 : i32
    %c0_i32_0 = arith.constant 0 : i32
    return %arg0, %arg1, %c0_i32 : i32, i32, i32
  }
}

</mosaic_0001>

<bundles_post_ra>
// kernel: tpu_custom_call.1
= control target key start
LH: loop header
LB: loop body
LE: loop exit
PB: predicated region body
PF: predicated region fallthrough
CT: control target
= control target key end

     0   :  { %s1343_s0 = inlined_call_operand.hbm [shape: f32[2,64,64], index: 0, kind: input, shape index: {}]   ;;  %s1344_s1 = inlined_call_operand.hbm [shape: f32[2,64], index: 1, kind: input, shape index: {}]   ;;  %s1345_s2 = inlined_call_operand.hbm [shape: bf16[64,64], index: 2, kind: input, shape index: {}]   ;;  %s1346_s3 = inlined_call_operand.vmem [shape: f32[1,64], index: 3, kind: input, shape index: {}]   ;;  %s1347_s4 = inlined_call_operand.hbm [shape: bf16[2,64,64], index: 4, kind: output, shape index: {}]  }
   0x1   :  { %1356 = sst [smem:[#allocation13_spill]] %s1344_s1 }
   0x2   :  { %9 = vsyncpa [#allocation3], 0 }
   0x3   :  { %11 = vsyncpa [#allocation3 + $0x1], 0 }
   0x4   :  { %12 = vsyncpa [#allocation6], 0 }
   0x5   :  { %13 = vsyncpa [#allocation4], 0 }
   0x6   :  { %15 = vsyncpa [#allocation4 + $0x1], 0  ;;  %s1077_s15 = smov 0   ;;  %s1079_s16 = smov 0  }
   0x7   :  { %s1081_s17 = smov 0   ;;  %s1083_s18 = smov 0  }
   0x8   :  { %s1085_s19 = smov 0   ;;  %s1087_s20 = smov 0  }
   0x9 LB: > { %1357 = sst [smem:[#allocation12_spill]] %s1040_s20  ;;  %s687_s21 = sadd.s32 4294967295, %s1040_s20   ;;  %s1040_s20 = sphi %s1087_s20, %s21_s20   ;;  %s1036_s19 = sphi %s1085_s19, %s1381_s19   ;;  %s1032_s18 = sphi %s1083_s18, %s1380_s18   ;;  %s1028_s17 = sphi %s1081_s17, %s1379_s17   ;;  %s1024_s16 = sphi %s1079_s16, %s1378_s16   ;;  %s1020_s15 = sphi %s1077_s15, %s1377_s15  }
   0xa   : > { %s688_s22 = sadd.s32 4294967294, %s1040_s20   ;;  %p49_p0 = scmp.ne.s32.totalorder %s1028_s17, %s1024_s16 }
   0xb   : > { %p50_p1 = scmp.eq.s32.totalorder %s1040_s20, 0  ;;  %p55_p2 = scmp.ne.s32.totalorder %s1024_s16, %s1020_s15 }
   0xc   : > { %p1115_p3 = scmp.eq.s32.totalorder %s687_s21, 0  ;;  %p144_p4 = scmp.eq.s32.totalorder %s687_s21, 1 }
   0xd   : > { %p1119_p5 = por %p50_p1, %p49_p0  ;;  %p150_p6 = scmp.eq.s32.totalorder %s688_s22, 1 }
   0xe   : > { %s1358_s24 = scalar_select %p1115_p3, 1, 0 }
   0xf   : > { %p1125_p7 = por %p1115_p3, %p55_p2  ;;  %p1129_p8 = por %p144_p4, %p49_p0 }
  0x10   : > { %p1133_p9 = por %p150_p6, %p55_p2  ;;  %p689_p10 = scmp.ge.s32.totalorder %s1040_s20, 1 }
  0x11   : > { %s1360_s26 = scalar_select %p1125_p7, 1, 0 }
  0x12   : > { %s1361_s27 = scalar_select %p1129_p8, 1, 0 }
  0x13   : > { %s1362_s28 = scalar_select %p1133_p9, 1, 0 }
  0x14   : > { %p157_p11 = scmp.lt.s32.totalorder %s1040_s20, 3  ;;  %s1042_s30 = smov [#allocation5]  }
  0x15   : > { %s170_s5 = sshll.u32 %s1042_s30, 4  ;;  %p796_p1 = scmp.lt.s32.totalorder %s1040_s20, 2  ;;  %s171_s5 = int_to_ptr.vmem [resolvable:$true] %s170_s5 }
  0x16   : > { %p1140_p13 = pnand %p689_p10, %p157_p11  ;;  %s1043_s7 = smov [#allocation7]  }
  0x17   : > { %p1149_p4 = pnand %p796_p1, %p1119_p5  ;;  %s180_s8 = sshll.u32 %s1043_s7, 4  ;;  %s181_s8 = int_to_ptr.vmem [resolvable:$true] %s180_s8 }
  0x18   : > { %s1363_s29 = scalar_select %p1140_p13, 1, 0 }
  0x19   : > { %p779_p0 = pneg %p1140_p13  ;;  %s887_s10 = scalar_lea.vmem %s171_s5, 32 }
  0x1a   : > { %s1364_s6 = scalar_select %p1149_p4, 1, 0 }
  0x1b   : > { %p1155_p2 = pnand %p779_p0, %p1115_p3  ;;  %p888_p10 = scmp.ne.s32.totalorder %s171_s5, %s887_s10 }
  0x1c   : > { %p895_p1 = scmp.lt.s32.totalorder %s171_s5, %s171_s5  ;;  %p896_p12 = scmp.lt.s32.totalorder %s887_s10, %s887_s10 }
  0x1d   : > { %p878_p6 = pneg %p1155_p2 }
  0x1e   : > { %p897_p9 = por %p896_p12, %p895_p1 }
  0x1f   : > { %p890_p5 = pnand %p888_p10, %p878_p6 }
  0x21   : > { %p891_p11 = pneg %p890_p5 }
  0x23   : > { %p898_p8 = pnand %p897_p9, %p891_p11 }
  0x25   : > { %901 = shalt.err (!%p898_p8)
}
  0x26   : > { %s1366_s1 = sld [smem:[#allocation13_spill]]  ;;  %s913_s13 = scalar_lea.vmem %s181_s8, 512 }
  0x27   : > { %p914_p0 = scmp.ne.s32.totalorder %s181_s8, %s913_s13  ;;  %p921_p10 = scmp.lt.s32.totalorder %s181_s8, %s181_s8 }
  0x28   : > { %p922_p5 = scmp.lt.s32.totalorder %s913_s13, %s913_s13 }
  0x29   : > { %p916_p3 = pnand %p914_p0, %p878_p6 }
  0x2a   : > { %p923_p13 = por %p922_p5, %p921_p10 }
  0x2b   : > { %p917_p7 = pneg %p916_p3 }
  0x2c   : > { %782 = dma.hbm_to_vmem [thread:$0]  (!%p1155_p2), %s1366_s1, 32, %s171_s5, [#allocation6]  }
  0x2d   : > { %p924_p4 = pnand %p923_p13, %p917_p7 }
  0x2f   : > { %927 = shalt.err (!%p924_p4)
}
  0x30   : > { %s1044_s14 = smov 64   ;;  %s1045_s21 = smov 4  }
  0x31   : > { %785 = dma.hbm_to_vmem [thread:$0]  (!%p1155_p2), %s1345_s2, 512, %s181_s8, [#allocation6], %s1044_s14, %s1044_s14, %s1045_s21  }
  0x32   : > { %s197_s30 = sand.u32 1, %s1028_s17   ;;  %s33_s5 = sadd.s32 1, %s1036_s19 }
  0x33   : > { %s693_s7 = sshll.u32 %s197_s30, 6  ;;  %p35_p3 = scmp.ge.s32.totalorder %s33_s5, 2 }
  0x34   : > { %s725_s10 = sshll.u32 %s1036_s19, 10  ;;  %s201_s11 = scalar_lea.vmem [#allocation2], %s693_s7 }
  0x35   : > { %s210_s12 = sshll.u32 %s201_s11, 4  ;;  %s1383_s5 = smov (%p35_p3, %s33_s5), 0  ;;  %s211_s12 = int_to_ptr.vmem [resolvable:$true] %s210_s12 }
  0x36   : > { %s209_s1 = scalar_lea.hbm %s1343_s0, %s725_s10  ;;  %s37_s9 = ssub.s32 %s1036_s19, %s1383_s5 }
  0x37   : > { %p1187_p7 = scmp.eq.s32.totalorder %s37_s9, 0  ;;  %s198_s8 = scalar_lea.sflag [#allocation3], %s197_s30 }
  0x38   : > { %p1368_p8 = scmp.ne.s32.totalorder %s1364_s6, 0  ;;  %s941_s14 = scalar_lea.vmem %s211_s12, 1024 }
  0x39   : > { %p942_p12 = scmp.ne.s32.totalorder %s211_s12, %s941_s14  ;;  %s1046_s21 = smov [#allocation2]  }
  0x3a   : > { %p930_p9 = pneg %p1368_p8  ;;  %s946_s22 = sshll.u32 %s1046_s21, 4  ;;  %s947_s22 = int_to_ptr.vmem [resolvable:$false] %s946_s22 }
  0x3b   : > { %s948_s25 = scalar_lea.vmem %s947_s22, 2048  ;;  %p949_p2 = scmp.lt.s32.totalorder %s211_s12, %s947_s22 }
  0x3c   : > { %p944_p13 = pnand %p942_p12, %p930_p9  ;;  %p950_p6 = scmp.lt.s32.totalorder %s948_s25, %s941_s14 }
  0x3e   : > { %p945_p4 = pneg %p944_p13  ;;  %p951_p11 = por %p950_p6, %p949_p2 }
  0x40   : > { %p952_p1 = pnand %p951_p11, %p945_p4 }
  0x42   : > { %955 = shalt.err (!%p952_p1)
}
  0x43   : > { %s1047_s23 = smov 128   ;;  %s1048_s30 = smov 8  }
  0x44   : > { %789 = dma.hbm_to_vmem [thread:$0]  (!%p1368_p8), %s209_s1, 1024, %s211_s12, %s198_s8, %s1047_s23, %s1047_s23, %s1048_s30  }
  0x45   : > { %s1369_s7 = sadd.s32 1, %s1028_s17  ;;  %p1370_p0 = scmp.ne.s32.totalorder %s1363_s29, 0 }
  0x46   : > { %s1200_s10 = scalar_select %p1187_p7, %s1028_s17, %s1369_s7  }
  0x47   : > { %222 = sbr.rel (%p1370_p0) target bundleno = 624 (0x270), region = 36  ;;  %s1205_s11 = sand.u32 (!%p1370_p0), 1, %s1024_s16  }
  0x48   : > { %s697_s13 = sshll.u32 (!%p1370_p0), %s1205_s11, 6  ;;  %s225_s9 = scalar_lea.sflag (!%p1370_p0), [#allocation3], %s1205_s11 }
  0x49   : > { %s228_s14 = scalar_lea.vmem (!%p1370_p0), [#allocation2], %s697_s13  ;;  %p1371_p10 = scmp.ne.s32.totalorder (!%p1370_p0), %s1360_s26, 0 }
  0x4c   : > { %1007 = dma.done.wait (%p1371_p10), %s225_s9, 1024  }
  0x4d   : > { %1009 = vsyncadd (%p1371_p10), %s225_s9, 4294966272  ;;  %p1372_p5 = scmp.ne.s32.totalorder %s1358_s24, 0 }
  0x4f   : > { %1011 = dma.done.wait (%p1372_p5), [#allocation6], 544  }
  0x50   : > { %1013 = vsyncadd (%p1372_p5), [#allocation6], 4294966752  ;;  %vm274_vm0 = vcmask 523264   ;;  %v264_v0 = vld [vmem:[%s228_s14] sm:$0xff]  ;;  %v265_v2 = vld [vmem:[%s228_s14 + $0x8] sm:$0xff]  ;;  %s700_s24 = sshll.u32 %s1205_s11, 5 }
  0x51   : > { %v268_v1 = vld [vmem:[%s228_s14 + $0x20] sm:$0xff]  ;;  %v275_v3 = vsel %vm274_vm0, %v264_v0, 0.0  ;;  %v269_v5 = vld [vmem:[%s228_s14 + $0x28] sm:$0xff]  ;;  %v278_v6 = vsel %vm274_vm0, %v265_v2, 0.0  ;;  %v266_v7 = vld [vmem:[%s228_s14 + $0x10] sm:$0xff]  ;;  %vm556_vm1 = vcmask 519168  }
  0x52   : > { %v287_v4 = vsel %vm274_vm0, %v268_v1, 0.0  ;;  %276 = vadd.xlane.f32.xlu0 %v275_v3  ;;  %v290_v8 = vsel %vm274_vm0, %v269_v5, 0.0  ;;  %v267_v9 = vld [vmem:[%s228_s14 + $0x18] sm:$0xff]  ;;  %v281_v10 = vsel %vm274_vm0, %v266_v7, 0.0  ;;  %v270_v12 = vld [vmem:[%s228_s14 + $0x30] sm:$0xff]  ;;  %v859_v59 = vld [vmem:[#allocation7] sm:$0xff]  }
  0x53   : > { %288 = vadd.xlane.f32.xlu1 %v287_v4  ;;  %v284_v11 = vsel %vm274_vm0, %v267_v9, 0.0  ;;  %v271_v13 = vld [vmem:[%s228_s14 + $0x38] sm:$0xff]  ;;  %v293_v14 = vsel %vm274_vm0, %v270_v12, 0.0  ;;  %v858_v58 = vld [vmem:[#allocation7 + $0x8] sm:$0xff]   ;;  %s260_s26 = scalar_lea.vmem [#allocation8], %s700_s24  ;;  %s734_s29 = sshll.u32 %s1032_s18, 9 }
  0x54   : > { %v296_v15 = vsel %vm274_vm0, %v271_v13, 0.0  ;;  %v856_v56 = vld [vmem:[#allocation7 + $0x18] sm:$0xff]   ;;  %v857_v57 = vld [vmem:[#allocation7 + $0x10] sm:$0xff]   ;;  %s581_s6 = sshll.u32 %s260_s26, 4  ;;  %s1291_s21 = scalar_lea.hbm %s1347_s4, %s734_s29  ;;  %s1293_s6 = int_to_ptr.vmem [resolvable:$true] %s581_s6 }
  0x55   : > { %743 = vmatprep.subr.bf16.mxu0 %v856_v56  ;;  %759 = vmatprep.subr.bf16.mxu1 %v856_v56  ;;  %s566_s18 = scalar_lea.sflag [#allocation4], %s1205_s11  ;;  %s956_s22 = scalar_lea.vmem %s1293_s6, 512 }
  0x56   : > { %279 = vadd.xlane.f32.xlu0 %v278_v6  ;;  %744 = vmatpush3.bf16.msra.mxu0 %v856_v56  ;;  %p957_p3 = scmp.ne.s32.totalorder %s1293_s6, %s956_s22  ;;  %p1373_p7 = scmp.ne.s32.totalorder %s1361_s27, 0 }
  0x57   : > { %291 = vadd.xlane.f32.xlu1 %v290_v8  ;;  %763 = vmatpush3.bf16.msra.mxu1 %v856_v56  ;;  %s1049_s25 = smov [#allocation8]  }
  0x58   : > { %745 = vmatprep.subr.bf16.mxu0 %v857_v57  ;;  %760 = vmatprep.subr.bf16.mxu1 %v857_v57  ;;  %p958_p8 = pnand %p957_p3, %p1373_p7  ;;  %s960_s23 = sshll.u32 %s1049_s25, 4  ;;  %s961_s23 = int_to_ptr.vmem [resolvable:$false] %s960_s23 }
  0x59   : > { %s962_s30 = scalar_lea.vmem %s961_s23, 1024  ;;  %p963_p12 = scmp.lt.s32.totalorder %s1293_s6, %s961_s23 }
  0x5a   : > { %282 = vadd.xlane.f32.xlu0 %v281_v10  ;;  %746 = vmatpush3.bf16.msra.mxu0 %v857_v57  ;;  %p959_p9 = pneg %p958_p8  ;;  %p964_p13 = scmp.lt.s32.totalorder %s962_s30, %s956_s22 }
  0x5b   : > { %285 = vadd.xlane.f32.xlu1 %v284_v11  ;;  %764 = vmatpush3.bf16.msra.mxu1 %v857_v57 }
  0x5c   : > { %747 = vmatprep.subr.bf16.mxu0 %v858_v58  ;;  %761 = vmatprep.subr.bf16.mxu1 %v858_v58  ;;  %p965_p4 = por %p964_p13, %p963_p12 }
  0x5e   : > { %294 = vadd.xlane.f32.xlu0 %v293_v14  ;;  %748 = vmatpush3.bf16.msra.mxu0 %v858_v58  ;;  %p966_p2 = pnand %p965_p4, %p959_p9 }
  0x5f   : > { %297 = vadd.xlane.f32.xlu1 %v296_v15  ;;  %765 = vmatpush3.bf16.msra.mxu1 %v858_v58 }
  0x60   : > { %749 = vmatprep.subr.bf16.mxu0 %v859_v59  ;;  %762 = vmatprep.subr.bf16.mxu1 %v859_v59 }
  0x62   : > { %750 = vmatpush3.bf16.msra.mxu0 %v859_v59 }
  0x63   : > { %766 = vmatpush3.bf16.msra.mxu1 %v859_v59 }
  0xdb   : > { %v277_v16 = vpop.xlane.xlu0 %276 }
  0xdc   : > { %v289_v17 = vpop.xlane.xlu1 %288  ;;  %v300_v18 = vmul.f32 0.015625, %v277_v16 }
  0xdd   : > { %v304_v19 = vmul.f32 0.015625, %v289_v17 }
  0xde   : > { %v1225_v20 = vsub.f32 %v264_v0, %v300_v18 }
  0xdf   : > { %v1227_v21 = vsub.f32 %v268_v1, %v304_v19  ;;  %v280_v22 = vpop.xlane.xlu0 %279 }
  0xe0   : > { %v292_v23 = vpop.xlane.xlu1 %291  ;;  %v301_v24 = vmul.f32 0.015625, %v280_v22  ;;  %v316_v26 = vmul.f32 %v1225_v20, %v1225_v20 }
  0xe1   : > { %v305_v25 = vmul.f32 0.015625, %v292_v23  ;;  %v320_v27 = vmul.f32 %v1227_v21, %v1227_v21 }
  0xe2   : > { %v1233_v28 = vsub.f32 %v265_v2, %v301_v24  ;;  %v324_v30 = vsel %vm274_vm0, %v316_v26, 0.0  ;;  %v701_v24 = vld [vmem:[#allocation5] ss:$0 sm:$0xff] }
  0xe3   : > { %v1235_v29 = vsub.f32 %v269_v5, %v305_v25  ;;  %325 = vadd.xlane.f32.xlu0 %v324_v30  ;;  %v283_v31 = vpop.xlane.xlu0 %282  ;;  %v336_v33 = vsel %vm274_vm0, %v320_v27, 0.0 }
  0xe4   : > { %v286_v32 = vpop.xlane.xlu1 %285  ;;  %v302_v34 = vmul.f32 0.015625, %v283_v31  ;;  %v317_v36 = vmul.f32 %v1233_v28, %v1233_v28  ;;  %v702_v31 = vld [vmem:[#allocation5 + $0x1] ss:$0 sm:$0xff] }
  0xe5   : > { %v303_v35 = vmul.f32 0.015625, %v286_v32  ;;  %v321_v37 = vmul.f32 %v1235_v29, %v1235_v29 }
  0xe6   : > { %v1243_v38 = vsub.f32 %v266_v7, %v302_v34  ;;  %v327_v40 = vsel %vm274_vm0, %v317_v36, 0.0 }
  0xe7   : > { %v1245_v39 = vsub.f32 %v267_v9, %v303_v35  ;;  %337 = vadd.xlane.f32.xlu0 %v336_v33  ;;  %328 = vadd.xlane.f32.xlu1 %v327_v40  ;;  %v295_v41 = vpop.xlane.xlu0 %294  ;;  %v339_v43 = vsel %vm274_vm0, %v321_v37, 0.0 }
  0xe8   : > { %v298_v42 = vpop.xlane.xlu1 %297  ;;  %v306_v44 = vmul.f32 0.015625, %v295_v41  ;;  %v318_v46 = vmul.f32 %v1243_v38, %v1243_v38 }
  0xe9   : > { %v307_v45 = vmul.f32 0.015625, %v298_v42  ;;  %v319_v47 = vmul.f32 %v1245_v39, %v1245_v39 }
  0xea   : > { %v1253_v48 = vsub.f32 %v270_v12, %v306_v44  ;;  %v330_v50 = vsel %vm274_vm0, %v318_v46, 0.0 }
  0xeb   : > { %v1255_v49 = vsub.f32 %v271_v13, %v307_v45  ;;  %340 = vadd.xlane.f32.xlu1 %v339_v43  ;;  %331 = vadd.xlane.f32.xlu0 %v330_v50  ;;  %v333_v51 = vsel %vm274_vm0, %v319_v47, 0.0 }
  0xec   : > { %v322_v52 = vmul.f32 %v1253_v48, %v1253_v48 }
  0xed   : > { %v323_v53 = vmul.f32 %v1255_v49, %v1255_v49 }
  0xee   : > { %v342_v54 = vsel %vm274_vm0, %v322_v52, 0.0 }
  0xef   : > { %334 = vadd.xlane.f32.xlu1 %v333_v51  ;;  %343 = vadd.xlane.f32.xlu0 %v342_v54  ;;  %v345_v55 = vsel %vm274_vm0, %v323_v53, 0.0 }
  0xf3   : > { %346 = vadd.xlane.f32.xlu1 %v345_v55 }
 0x16c   : > { %v326_v60 = vpop.xlane.xlu0 %325 }
 0x16d   : > { %v348_v61 = vmul.f32 0.015625, %v326_v60 }
 0x16f   : > { %v356_v62 = vadd.f32 1e-06, %v348_v61 }
 0x170   : > { %v329_v63 = vpop.xlane.xlu1 %328  ;;  %v338_v0 = vpop.xlane.xlu0 %337 }
 0x171   : > { %860 = vrsqrt.f32 %v356_v62  ;;  %v349_v1 = vmul.f32 0.015625, %v329_v63  ;;  %v352_v2 = vmul.f32 0.015625, %v338_v0 }
 0x173   : > { %v357_v3 = vadd.f32 1e-06, %v349_v1  ;;  %v360_v4 = vadd.f32 1e-06, %v352_v2 }
 0x174   : > { %v341_v5 = vpop.xlane.xlu1 %340  ;;  %v332_v6 = vpop.xlane.xlu0 %331 }
 0x175   : > { %862 = vrsqrt.f32 %v357_v3  ;;  %v353_v7 = vmul.f32 0.015625, %v341_v5  ;;  %v350_v8 = vmul.f32 0.015625, %v332_v6 }
 0x176   : > { %864 = vrsqrt.f32 %v360_v4 }
 0x177   : > { %v361_v9 = vadd.f32 1e-06, %v353_v7  ;;  %v358_v10 = vadd.f32 1e-06, %v350_v8 }
 0x178   : > { %v335_v11 = vpop.xlane.xlu1 %334  ;;  %v344_v12 = vpop.xlane.xlu0 %343 }
 0x179   : > { %866 = vrsqrt.f32 %v361_v9  ;;  %v351_v13 = vmul.f32 0.015625, %v335_v11  ;;  %v354_v14 = vmul.f32 0.015625, %v344_v12 }
 0x17a   : > { %868 = vrsqrt.f32 %v358_v10 }
 0x17b   : > { %v359_v15 = vadd.f32 1e-06, %v351_v13  ;;  %v362_v16 = vadd.f32 1e-06, %v354_v14 }
 0x17c   : > { %v347_v17 = vpop.xlane.xlu1 %346 }
 0x17d   : > { %870 = vrsqrt.f32 %v359_v15  ;;  %v355_v18 = vmul.f32 0.015625, %v347_v17 }
 0x17e   : > { %v861_v19 = vpop.eup %860  ;;  %872 = vrsqrt.f32 %v362_v16 }
 0x17f   : > { %v363_v22 = vadd.f32 1e-06, %v355_v18  ;;  %v372_v23 = vmul.f32 %v861_v19, %v1225_v20 }
 0x181   : > { %874 = vrsqrt.f32 %v363_v22  ;;  %v384_v30 = vmul.f32 %v701_v24, %v372_v23 }
 0x182   : > { %v863_v25 = vpop.eup %862 }
 0x183   : > { %v865_v26 = vpop.eup %864  ;;  %v373_v27 = vmul.f32 %v863_v25, %v1233_v28  ;;  %v396_v36 = vadd.f32 %v702_v31, %v384_v30 }
 0x184   : > { %v376_v32 = vmul.f32 %v865_v26, %v1227_v21 }
 0x185   : > { %v385_v33 = vmul.f32 %v701_v24, %v373_v27 }
 0x186   : > { %v867_v34 = vpop.eup %866  ;;  %v388_v41 = vmul.f32 %v701_v24, %v376_v32 }
 0x187   : > { %v869_v35 = vpop.eup %868  ;;  %v397_v37 = vadd.f32 %v702_v31, %v385_v33  ;;  %v377_v40 = vmul.f32 %v867_v34, %v1235_v29 }
 0x188   : > { %v374_v20 = vmul.f32 %v869_v35, %v1243_v38  ;;  %v400_v28 = vadd.f32 %v702_v31, %v388_v41 }
 0x189   : > { %v404_v42 = vpack.c.bf16 %v397_v37, %v396_v36  ;;  %v389_v43 = vmul.f32 %v701_v24, %v377_v40 }
 0x18a   : > { %v871_v44 = vpop.eup %870  ;;  %v386_v47 = vmul.f32 %v701_v24, %v374_v20 }
 0x18b   : > { %v873_v45 = vpop.eup %872  ;;  %751 = vmatprep.mubr.msk.bf16.mxu0 %vm274_vm0, %v404_v42  ;;  %v401_v46 = vadd.f32 %v702_v31, %v389_v43  ;;  %v375_v21 = vmul.f32 %v871_v44, %v1245_v39 }
 0x18c   : > { %v378_v50 = vmul.f32 %v873_v45, %v1253_v48  ;;  %v398_v38 = vadd.f32 %v702_v31, %v386_v47  ;;  %v703_v48 = vld [vmem:[%s1346_s3] ss:$0 sm:$0xff] }
 0x18d   : > { %v406_v51 = vpack.c.bf16 %v401_v46, %v400_v28  ;;  %v387_v52 = vmul.f32 %v701_v24, %v375_v21 }
 0x18e   : > { %v875_v29 = vpop.eup %874  ;;  %v390_v55 = vmul.f32 %v701_v24, %v378_v50 }
 0x18f   : > { %755 = vmatprep.mubr.msk.bf16.mxu1 %vm274_vm0, %v406_v51  ;;  %v399_v53 = vadd.f32 %v702_v31, %v387_v52  ;;  %v379_v54 = vmul.f32 %v875_v29, %v1255_v49 }
 0x190   : > { %v402_v58 = vadd.f32 %v702_v31, %v390_v55 }
 0x191   : > { %v405_v56 = vpack.c.bf16 %v399_v53, %v398_v38  ;;  %v391_v57 = vmul.f32 %v701_v24, %v379_v54 }
 0x193   : > { %752 = vmatmul.mubr.msk.bf16.vlgmr.msra.gmra.mxu0 %vm274_vm0, %v405_v56  ;;  %v403_v39 = vadd.f32 %v702_v31, %v391_v57 }
 0x195   : > { %v407_v59 = vpack.c.bf16 %v403_v39, %v402_v58 }
 0x197   : > { %756 = vmatmul.mubr.msk.bf16.vlgmr.msra.gmra.mxu1 %vm274_vm0, %v407_v59 }
 0x253   : > { %v753_v60 = vpop.f32.mrf.mxu0 }
 0x254   : > { %v502_v61 = vadd.f32 %v753_v60, %v703_v48 }
 0x255   : > { %v493_v62 = vpop.f32.mrf.mxu0 }
 0x256   : > { %v728_v49 = vpack.c.bf16 %v502_v61, %v502_v61  ;;  %v494_v63 = vadd.f32 %v703_v48, %v493_v62 }
 0x257   : > { %v754_v0 = vpop.f32.mrf.mxu0  ;;  %v757_v1 = vpop.f32.mrf.mxu1 }
 0x258   : > { %559 = vst.msk [vmem:[%s260_s26 + $0x8] sm:$0xf] %vm556_vm1, %v728_v49  ;;  %v726_v2 = vpack.c.bf16 %v494_v63, %v494_v63  ;;  %v505_v3 = vadd.f32 %v754_v0, %v703_v48  ;;  %v518_v4 = vadd.f32 %v757_v1, %v703_v48 }
 0x259   : > { %v496_v5 = vpop.f32.mrf.mxu0  ;;  %v509_v6 = vpop.f32.mrf.mxu1 }
 0x25a   : > { %557 = vst.msk [vmem:[%s260_s26] sm:$0xf] %vm556_vm1, %v726_v2  ;;  %v729_v7 = vpack.c.bf16 %v505_v3, %v505_v3  ;;  %v732_v8 = vpack.c.bf16 %v518_v4, %v518_v4  ;;  %v497_v9 = vadd.f32 %v703_v48, %v496_v5  ;;  %v510_v10 = vadd.f32 %v703_v48, %v509_v6 }
 0x25b   : > { %v758_v11 = vpop.f32.mrf.mxu1 }
 0x25c   : > { %560 = vst.msk [vmem:[%s260_s26 + $0xc] sm:$0xf] %vm556_vm1, %v729_v7  ;;  %563 = vst.msk [vmem:[%s260_s26 + $0x18] sm:$0xf] %vm556_vm1, %v732_v8  ;;  %v727_v12 = vpack.c.bf16 %v497_v9, %v497_v9  ;;  %v730_v13 = vpack.c.bf16 %v510_v10, %v510_v10  ;;  %v521_v14 = vadd.f32 %v758_v11, %v703_v48 }
 0x25d   : > { %v512_v15 = vpop.f32.mrf.mxu1 }
 0x25e   : > { %558 = vst.msk [vmem:[%s260_s26 + $0x4] sm:$0xf] %vm556_vm1, %v727_v12  ;;  %561 = vst.msk [vmem:[%s260_s26 + $0x10] sm:$0xf] %vm556_vm1, %v730_v13  ;;  %v733_v16 = vpack.c.bf16 %v521_v14, %v521_v14  ;;  %v513_v17 = vadd.f32 %v703_v48, %v512_v15 }
 0x260   : > { %564 = vst.msk [vmem:[%s260_s26 + $0x1c] sm:$0xf] %vm556_vm1, %v733_v16  ;;  %v731_v18 = vpack.c.bf16 %v513_v17, %v513_v17 }
 0x262   : > { %562 = vst.msk [vmem:[%s260_s26 + $0x14] sm:$0xf] %vm556_vm1, %v731_v18 }
 0x263   : > { %969 = shalt.err (!%p966_p2)
}
 0x264   : > { %s970_s7 = scalar_lea.hbm %s1291_s21, 512  ;;  %s974_s14 = scalar_lea.hbm %s1347_s4, 1024 }
 0x265   : > { %p971_p6 = scmp.ne.s32.totalorder %s1291_s21, %s970_s7  ;;  %p975_p0 = scmp.lt.s32.totalorder %s1291_s21, %s1347_s4 }
 0x266   : > { %p976_p10 = scmp.lt.s32.totalorder %s974_s14, %s970_s7 }
 0x267   : > { %p972_p11 = pnand %p971_p6, %p1373_p7 }
 0x268   : > { %p977_p5 = por %p976_p10, %p975_p0 }
 0x269   : > { %p973_p1 = pneg %p972_p11 }
 0x26b   : > { %p978_p3 = pnand %p977_p5, %p973_p1 }
 0x26d   : > { %981 = shalt.err (!%p978_p3)
}
 0x26e   : > { %s1050_s24 = smov 64   ;;  %s1051_s26 = smov 4  }
 0x26f   : > { %777 = dma.vmem_to_hbm [thread:$0]  (%p1373_p7), %s1293_s6, 512, %s1291_s21, %s566_s18, %s1050_s24, %s1050_s24, %s1051_s26  }
 0x270 PF: > { %s1374_s29 = sld [smem:[#allocation12_spill]]  ;;  %s596_s12 = sand.u32 1, %s1020_s15  }
 0x271   : > { %p1375_p8 = scmp.ne.s32.totalorder %s1362_s28, 0  ;;  %s597_s8 = scalar_lea.sflag [#allocation4], %s596_s12 }
 0x276   : > { %p1376_p9 = scmp.ge.s32.totalorder %s1374_s29, 2 }
 0x278   : > { %p791_p12 = pnand %p1376_p9, %p1375_p8 }
 0x27a   : > { %p792_p13 = pneg %p791_p12 }
 0x27c   : > { %1015 = dma.done.wait (%p792_p13), %s597_s8, 512  }
 0x27d   : > { %1017 = vsyncadd (%p792_p13), %s597_s8, 4294966784  ;;  %s21_s20 = sadd.s32 1, %s1374_s29   ;;  %s1377_s15 = smov %s1024_s16 }
 0x27e   : > { %p18_p4 = scmp.ge.s32.totalorder %s21_s20, 4   ;;  %s1378_s16 = smov %s1028_s17 }
 0x27f   : > { %s1379_s17 = smov %s1200_s10  ;;  %s1380_s18 = smov %s1036_s19 }
 0x280   : > { %s1381_s19 = smov %s1383_s5  ;;  %20 = sbr.rel (!%p18_p4) target bundleno = 9 (0x9), region = 89 }
 0x285   :  { %602 = vsyncpa [#allocation3], 1 }
 0x286   :  { %604 = vsyncpa [#allocation3 + $0x1], 1 }
 0x287   :  { %605 = vsyncpa [#allocation6], 1 }
 0x288   :  { %606 = vsyncpa [#allocation4], 1 }
 0x289   :  { %608 = vsyncpa [#allocation4 + $0x1], 1 }

</bundles_post_ra>
